<compile_context>
chip_gen: v6e
topology: v6e:2x2x1
jax: 0.10.0
libtpu: 0.0.40
codegen_flags: <defaults>
</compile_context>

<pallas_src>
import functools

import jax
import jax.numpy as jnp
from jax.experimental import pallas as pl
from jax.experimental.pallas import tpu as pltpu

# ----------------------------- model sizes ---------------------------------
NODE_INPUT_DIM = 4
NODE_HIDDEN_DIM = 128          # 2*128 + 1 + 2 = 259  (matches fc1 in_dim)
EDGE_HIDDEN_DIM = 64
OUTPUT_DIM = 1
ATT_HIDDEN = 64
ATT_HEADS = 4
ATT_TEMPERATURE = 0.1
EDGE_SCALE = 20.0

N_NODES = 16
N_EDGES = 32

_VMEM = pl.BlockSpec(memory_space=pltpu.MemorySpace.VMEM)
_SMEM = pl.BlockSpec(memory_space=pltpu.MemorySpace.SMEM)


# --------------------------- single fused kernel -----------------------------
def _gnn_fused_kernel(
        glob_ref, scal_ref,                                     # SMEM scalars
        a_ref, x_ref,                                           # graph / node feats
        w1_ref, b1_ref, w2_ref, b2_ref, w3_ref, b3_ref,         # GCN weights
        srow_ref, scol_ref, attr_ref,                           # edge structure
        wr_ref, wc_ref, wattr_a_ref, ba_ref, whm_ref,           # attention (folded)
        wattr_f_ref, wg0_ref, wg1_ref, bf1_ref, wf2_ref,        # fc head (folded)
        out_ref):
    f32 = jnp.float32
    bf16 = jnp.bfloat16

    alpha = glob_ref[0]            # scalar (SMEM)
    mu = glob_ref[1]
    bh_mean = scal_ref[0]          # folded mean of attention-head bias
    bf2_b = scal_ref[1]            # fc2 bias (scalar, OUTPUT_DIM == 1)

    a = a_ref[...]                                              # (N, N) bf16

    # ---- 3x GCNConv + ReLU:  relu(A_hat @ (H W) + b), bf16 MXU / f32 acc ----
    h = jnp.dot(x_ref[...].astype(bf16), w1_ref[...], preferred_element_type=f32)
    h = jnp.maximum(jnp.dot(a, h.astype(bf16), preferred_element_type=f32)
                    + b1_ref[...], 0.0)
    h = jnp.dot(h.astype(bf16), w2_ref[...], preferred_element_type=f32)
    h = jnp.maximum(jnp.dot(a, h.astype(bf16), preferred_element_type=f32)
                    + b2_ref[...], 0.0)
    h = jnp.dot(h.astype(bf16), w3_ref[...], preferred_element_type=f32)
    h = jnp.maximum(jnp.dot(a, h.astype(bf16), preferred_element_type=f32)
                    + b3_ref[...], 0.0)
    nh = h.astype(bf16)                                         # (N, 128)

    # ---- in-kernel gather via one-hot selectors (MXU) ----
    emb_row = jnp.dot(srow_ref[...], nh, preferred_element_type=f32)   # (E, 128)
    emb_col = jnp.dot(scol_ref[...], nh, preferred_element_type=f32)   # (E, 128)

    # ---- fused attention/fc1 matmul: cols [0:64]=attention, [64:128]=fc1 ----
    pre = (jnp.dot(emb_row.astype(bf16), wr_ref[...], preferred_element_type=f32)
           + jnp.dot(emb_col.astype(bf16), wc_ref[...], preferred_element_type=f32))

    attr = attr_ref[...]                                        # (E, 1) f32

    # attention branch: input = [edge_emb, 20*pad(attr->4)]; only first padded
    # column is non-zero (its 20x scale is folded into wattr_a at init).
    h_att = jnp.maximum(pre[:, :ATT_HIDDEN] + attr * wattr_a_ref[...]
                        + ba_ref[...], 0.0)                     # (E, 64)
    # head matmul + mean-over-heads folded into whm (64,1) / bh_mean scalar
    score = jnp.dot(h_att, whm_ref[...], preferred_element_type=f32)   # (E, 1)
    z = (score + (alpha + bh_mean)) * (1.0 / ATT_TEMPERATURE)
    ez = jnp.exp(-jnp.abs(z))                                   # stable sigmoid
    att = jnp.where(z >= 0.0, 1.0 / (1.0 + ez), ez / (1.0 + ez))        # (E, 1)

    # fc1 on combined = [att*edge_emb(256), attr(1), alpha, mu]  (259-dim);
    # (att*emb) @ Wf1_emb == att * (emb @ Wf1_emb) == att * pre[:, 64:]
    g = alpha * wg0_ref[...] + mu * wg1_ref[...]                # (1, 64)
    hidden = jnp.maximum(att * pre[:, ATT_HIDDEN:]
                         + attr * wattr_f_ref[...] + g + bf1_ref[...], 0.0)

    logits = jnp.dot(hidden, wf2_ref[...], preferred_element_type=f32) + bf2_b
    # numerically-stable softplus
    count = jnp.maximum(logits, 0.0) + jnp.log1p(jnp.exp(-jnp.abs(logits)))
    inv_mu = 1.0 / mu
    prob = jnp.clip(count * inv_mu, 0.0, 1.0)                   # (E, 1)

    # single packed, lane-contiguous store: [prob | att]
    out_ref[...] = jnp.concatenate([prob, att], axis=1)         # (E, 2)


# ------------------------------- wrapper -------------------------------------
@functools.partial(jax.jit, static_argnames=("debug",))
def gnn_forward(x, a_hat, s_row, s_col, edge_attr, alpha, mu,
                gcn, edge, debug=False):
    e = edge_attr.shape[0]
    glob = jnp.stack([alpha[0, 0], mu[0, 0]]).astype(jnp.float32)     # (2,) SMEM

    out = pl.pallas_call(
        _gnn_fused_kernel,
        out_shape=jax.ShapeDtypeStruct((e, 2), jnp.float32),
        in_specs=[_SMEM, _SMEM] + [_VMEM] * 21,
        out_specs=_VMEM,
    )(glob, edge["scal"],
      a_hat, x,
      gcn["w1"], gcn["b1"], gcn["w2"], gcn["b2"], gcn["w3"], gcn["b3"],
      s_row, s_col, edge_attr,
      edge["wr"], edge["wc"], edge["wattr_a"], edge["ba"], edge["whm"],
      edge["wattr_f"], edge["wg0"], edge["wg1"], edge["bf1"], edge["wf2"])

    prob = out[:, 0:1]
    att = out[:, 1:2]
    if debug:
        return prob, att
    return prob


# ------------------------------- glue (once) ---------------------------------
def precompute_graph(edge_index, n_nodes):
    """Dense GCN-normalized adjacency D^{-1/2}(A+I)D^{-1/2} and one-hot
    row/col selector matrices. Static per graph -> hoisted out of the jitted
    forward pass."""
    row, col = edge_index[0], edge_index[1]
    a = jnp.zeros((n_nodes, n_nodes), jnp.float32)
    # message flows source (row=edge_index[0]) -> target (edge_index[1])
    a = a.at[col, row].add(1.0)
    a = a + jnp.eye(n_nodes, dtype=jnp.float32)          # self loops
    deg = jnp.sum(a, axis=1)
    dinv = jnp.where(deg > 0, 1.0 / jnp.sqrt(deg), 0.0)
    a_hat = (dinv[:, None] * a * dinv[None, :]).astype(jnp.bfloat16)
    s_row = jax.nn.one_hot(row, n_nodes, dtype=jnp.bfloat16)   # (E, N)
    s_col = jax.nn.one_hot(col, n_nodes, dtype=jnp.bfloat16)   # (E, N)
    return a_hat, s_row, s_col


def init_params(key):
    ks = jax.random.split(key, 8)

    def lin(k, fan_in, fan_out):
        kw, kb = jax.random.split(k)
        s = 1.0 / jnp.sqrt(jnp.float32(fan_in))
        w = jax.random.uniform(kw, (fan_in, fan_out), jnp.float32, -s, s)
        b = jax.random.uniform(kb, (1, fan_out), jnp.float32, -s, s)
        return w, b

    w1, b1 = lin(ks[0], NODE_INPUT_DIM, NODE_HIDDEN_DIM)
    w2, b2 = lin(ks[1], NODE_HIDDEN_DIM, NODE_HIDDEN_DIM)
    w3, b3 = lin(ks[2], NODE_HIDDEN_DIM, NODE_HIDDEN_DIM)
    gcn = dict(w1=w1.astype(jnp.bfloat16), b1=b1,
               w2=w2.astype(jnp.bfloat16), b2=b2,
               w3=w3.astype(jnp.bfloat16), b3=b3)

    att_in = 2 * NODE_HIDDEN_DIM + 4                     # 260
    wa_full, ba = lin(ks[3], att_in, ATT_HIDDEN)         # (260, 64)
    wh, bh = lin(ks[4], ATT_HIDDEN, ATT_HEADS)           # (64, 4)
    wf1_full, bf1 = lin(ks[5], 2 * NODE_HIDDEN_DIM + 3, EDGE_HIDDEN_DIM)  # (259, 64)
    wf2, bf2 = lin(ks[6], EDGE_HIDDEN_DIM, OUTPUT_DIM)   # (64, 1)

    emb = 2 * NODE_HIDDEN_DIM                            # 256
    # fuse attention weight (cols 0:64) and fc1 weight (cols 64:128) for the
    # 256-d edge embedding; split per endpoint so no (E,256) concat is needed.
    wcomb = jnp.concatenate([wa_full[:emb], wf1_full[:emb]], axis=1)  # (256, 128)

    edge = dict(
        wr=wcomb[:NODE_HIDDEN_DIM].astype(jnp.bfloat16),          # (128, 128)
        wc=wcomb[NODE_HIDDEN_DIM:emb].astype(jnp.bfloat16),       # (128, 128)
        wattr_a=EDGE_SCALE * wa_full[emb:emb + 1],                # (1, 64) 20x folded
        ba=ba,                                                    # (1, 64)
        whm=jnp.mean(wh, axis=1, keepdims=True),                  # (64, 1) head mean
        wattr_f=wf1_full[emb:emb + 1],                            # (1, 64) attr col of fc1
        wg0=wf1_full[emb + 1:emb + 2],                            # (1, 64) alpha col of fc1
        wg1=wf1_full[emb + 2:emb + 3],                            # (1, 64) mu    col of fc1
        bf1=bf1,                                                  # (1, 64)
        wf2=wf2,                                                  # (64, 1)
        scal=jnp.stack([jnp.mean(bh), bf2[0, 0]]).astype(jnp.float32),  # SMEM scalars
    )
    return gcn, edge


if __name__ == "__main__":
    key = jax.random.PRNGKey(0)
    k_x, k_attr, k_p = jax.random.split(key, 3)

    x = jax.random.normal(k_x, (N_NODES, NODE_INPUT_DIM), jnp.float32)
    idx = jnp.arange(N_EDGES)
    row = idx % N_NODES
    col = (3 * idx + 1) % N_NODES
    edge_index = jnp.stack([row, col]).astype(jnp.int32)           # (2, E)
    edge_attr = jax.random.uniform(k_attr, (N_EDGES, 1), jnp.float32)
    alpha = jnp.array([[0.5]], jnp.float32)                        # (1, 1)
    mu = jnp.array([[2.0]], jnp.float32)                           # (1, 1)

    gcn_params, edge_params = init_params(k_p)
    # static graph -> adjacency / selectors precomputed once, outside the jit
    a_hat, s_row, s_col = precompute_graph(edge_index, N_NODES)

    prob = gnn_forward(x, a_hat, s_row, s_col, edge_attr, alpha, mu,
                       gcn_params, edge_params)
    jax.block_until_ready(prob)
    assert prob.shape == (N_EDGES, OUTPUT_DIM)
    assert bool(jnp.all(jnp.isfinite(prob)))
    assert bool(jnp.all((prob >= 0.0) & (prob <= 1.0)))

    # debug path (prob, att) exercised once as well
    prob_d, att_d = gnn_forward(x, a_hat, s_row, s_col, edge_attr, alpha, mu,
                                gcn_params, edge_params, debug=True)
    jax.block_until_ready(att_d)
    assert att_d.shape == (N_EDGES, 1)
    assert bool(jnp.all((att_d >= 0.0) & (att_d <= 1.0)))
    print("KERNEL_OK")
</pallas_src>

<mosaic_0001>
module attributes {stable_mosaic.version = 11 : i64} {
  func.func @_gnn_fused_kernel(%arg0: memref<2xf32, #tpu.memory_space<smem>>, %arg1: memref<2xf32, #tpu.memory_space<smem>>, %arg2: memref<16x16xbf16, #tpu.memory_space<vmem>>, %arg3: memref<16x4xf32, #tpu.memory_space<vmem>>, %arg4: memref<4x128xbf16, #tpu.memory_space<vmem>>, %arg5: memref<1x128xf32, #tpu.memory_space<vmem>>, %arg6: memref<128x128xbf16, #tpu.memory_space<vmem>>, %arg7: memref<1x128xf32, #tpu.memory_space<vmem>>, %arg8: memref<128x128xbf16, #tpu.memory_space<vmem>>, %arg9: memref<1x128xf32, #tpu.memory_space<vmem>>, %arg10: memref<32x16xbf16, #tpu.memory_space<vmem>>, %arg11: memref<32x16xbf16, #tpu.memory_space<vmem>>, %arg12: memref<32x1xf32, #tpu.memory_space<vmem>>, %arg13: memref<128x128xbf16, #tpu.memory_space<vmem>>, %arg14: memref<128x128xbf16, #tpu.memory_space<vmem>>, %arg15: memref<1x64xf32, #tpu.memory_space<vmem>>, %arg16: memref<1x64xf32, #tpu.memory_space<vmem>>, %arg17: memref<64x1xf32, #tpu.memory_space<vmem>>, %arg18: memref<1x64xf32, #tpu.memory_space<vmem>>, %arg19: memref<1x64xf32, #tpu.memory_space<vmem>>, %arg20: memref<1x64xf32, #tpu.memory_space<vmem>>, %arg21: memref<1x64xf32, #tpu.memory_space<vmem>>, %arg22: memref<64x1xf32, #tpu.memory_space<vmem>>, %arg23: memref<32x2xf32, #tpu.memory_space<vmem>>) attributes {dimension_semantics = [], scalar_prefetch = 0 : i64, scratch_operands = 0 : i64, tpu.core_type = #tpu.core_type<tc>} {
    %c0 = arith.constant 0 : index
    %0 = memref.load %arg0[%c0] : memref<2xf32, #tpu.memory_space<smem>>
    %c1 = arith.constant 1 : index
    %1 = memref.load %arg0[%c1] : memref<2xf32, #tpu.memory_space<smem>>
    %c0_0 = arith.constant 0 : index
    %2 = memref.load %arg1[%c0_0] : memref<2xf32, #tpu.memory_space<smem>>
    %c1_1 = arith.constant 1 : index
    %3 = memref.load %arg1[%c1_1] : memref<2xf32, #tpu.memory_space<smem>>
    %c0_2 = arith.constant 0 : index
    %c0_3 = arith.constant 0 : index
    %4 = vector.load %arg2[%c0_2, %c0_3] : memref<16x16xbf16, #tpu.memory_space<vmem>>, vector<16x16xbf16>
    %c0_4 = arith.constant 0 : index
    %c0_5 = arith.constant 0 : index
    %5 = vector.load %arg3[%c0_4, %c0_5] : memref<16x4xf32, #tpu.memory_space<vmem>>, vector<16x4xf32>
    %6 = arith.truncf %5 : vector<16x4xf32> to vector<16x4xbf16>
    %c0_6 = arith.constant 0 : index
    %c0_7 = arith.constant 0 : index
    %7 = vector.load %arg4[%c0_6, %c0_7] : memref<4x128xbf16, #tpu.memory_space<vmem>>, vector<4x128xbf16>
    %cst = arith.constant dense<0.000000e+00> : vector<16x128xf32>
    %8 = tpu.matmul %6, %7, %cst {dimension_numbers = #tpu.dot_dimension_numbers<[1], [0], [0], [1], [0, 0, 1, 1], [], []>} : vector<16x4xbf16>, vector<4x128xbf16>, vector<16x128xf32> -> vector<16x128xf32>
    %9 = arith.truncf %8 : vector<16x128xf32> to vector<16x128xbf16>
    %cst_8 = arith.constant dense<0.000000e+00> : vector<16x128xf32>
    %10 = tpu.matmul %4, %9, %cst_8 {dimension_numbers = #tpu.dot_dimension_numbers<[1], [0], [0], [1], [0, 0, 1, 1], [], []>} : vector<16x16xbf16>, vector<16x128xbf16>, vector<16x128xf32> -> vector<16x128xf32>
    %c0_9 = arith.constant 0 : index
    %c0_10 = arith.constant 0 : index
    %11 = vector.load %arg5[%c0_9, %c0_10] : memref<1x128xf32, #tpu.memory_space<vmem>>, vector<1x128xf32>
    %12 = vector.broadcast %11 : vector<1x128xf32> to vector<16x128xf32>
    %13 = arith.addf %10, %12 : vector<16x128xf32>
    %cst_11 = arith.constant 0.000000e+00 : f32
    %14 = vector.broadcast %cst_11 : f32 to vector<16x128xf32>
    %15 = arith.maximumf %13, %14 : vector<16x128xf32>
    %16 = arith.truncf %15 : vector<16x128xf32> to vector<16x128xbf16>
    %c0_12 = arith.constant 0 : index
    %c0_13 = arith.constant 0 : index
    %17 = vector.load %arg6[%c0_12, %c0_13] : memref<128x128xbf16, #tpu.memory_space<vmem>>, vector<128x128xbf16>
    %cst_14 = arith.constant dense<0.000000e+00> : vector<16x128xf32>
    %18 = tpu.matmul %16, %17, %cst_14 {dimension_numbers = #tpu.dot_dimension_numbers<[1], [0], [0], [1], [0, 0, 1, 1], [], []>} : vector<16x128xbf16>, vector<128x128xbf16>, vector<16x128xf32> -> vector<16x128xf32>
    %19 = arith.truncf %18 : vector<16x128xf32> to vector<16x128xbf16>
    %cst_15 = arith.constant dense<0.000000e+00> : vector<16x128xf32>
    %20 = tpu.matmul %4, %19, %cst_15 {dimension_numbers = #tpu.dot_dimension_numbers<[1], [0], [0], [1], [0, 0, 1, 1], [], []>} : vector<16x16xbf16>, vector<16x128xbf16>, vector<16x128xf32> -> vector<16x128xf32>
    %c0_16 = arith.constant 0 : index
    %c0_17 = arith.constant 0 : index
    %21 = vector.load %arg7[%c0_16, %c0_17] : memref<1x128xf32, #tpu.memory_space<vmem>>, vector<1x128xf32>
    %22 = vector.broadcast %21 : vector<1x128xf32> to vector<16x128xf32>
    %23 = arith.addf %20, %22 : vector<16x128xf32>
    %cst_18 = arith.constant 0.000000e+00 : f32
    %24 = vector.broadcast %cst_18 : f32 to vector<16x128xf32>
    %25 = arith.maximumf %23, %24 : vector<16x128xf32>
    %26 = arith.truncf %25 : vector<16x128xf32> to vector<16x128xbf16>
    %c0_19 = arith.constant 0 : index
    %c0_20 = arith.constant 0 : index
    %27 = vector.load %arg8[%c0_19, %c0_20] : memref<128x128xbf16, #tpu.memory_space<vmem>>, vector<128x128xbf16>
    %cst_21 = arith.constant dense<0.000000e+00> : vector<16x128xf32>
    %28 = tpu.matmul %26, %27, %cst_21 {dimension_numbers = #tpu.dot_dimension_numbers<[1], [0], [0], [1], [0, 0, 1, 1], [], []>} : vector<16x128xbf16>, vector<128x128xbf16>, vector<16x128xf32> -> vector<16x128xf32>
    %29 = arith.truncf %28 : vector<16x128xf32> to vector<16x128xbf16>
    %cst_22 = arith.constant dense<0.000000e+00> : vector<16x128xf32>
    %30 = tpu.matmul %4, %29, %cst_22 {dimension_numbers = #tpu.dot_dimension_numbers<[1], [0], [0], [1], [0, 0, 1, 1], [], []>} : vector<16x16xbf16>, vector<16x128xbf16>, vector<16x128xf32> -> vector<16x128xf32>
    %c0_23 = arith.constant 0 : index
    %c0_24 = arith.constant 0 : index
    %31 = vector.load %arg9[%c0_23, %c0_24] : memref<1x128xf32, #tpu.memory_space<vmem>>, vector<1x128xf32>
    %32 = vector.broadcast %31 : vector<1x128xf32> to vector<16x128xf32>
    %33 = arith.addf %30, %32 : vector<16x128xf32>
    %cst_25 = arith.constant 0.000000e+00 : f32
    %34 = vector.broadcast %cst_25 : f32 to vector<16x128xf32>
    %35 = arith.maximumf %33, %34 : vector<16x128xf32>
    %36 = arith.truncf %35 : vector<16x128xf32> to vector<16x128xbf16>
    %c0_26 = arith.constant 0 : index
    %c0_27 = arith.constant 0 : index
    %37 = vector.load %arg10[%c0_26, %c0_27] : memref<32x16xbf16, #tpu.memory_space<vmem>>, vector<32x16xbf16>
    %cst_28 = arith.constant dense<0.000000e+00> : vector<32x128xf32>
    %38 = tpu.matmul %37, %36, %cst_28 {dimension_numbers = #tpu.dot_dimension_numbers<[1], [0], [0], [1], [0, 0, 1, 1], [], []>} : vector<32x16xbf16>, vector<16x128xbf16>, vector<32x128xf32> -> vector<32x128xf32>
    %c0_29 = arith.constant 0 : index
    %c0_30 = arith.constant 0 : index
    %39 = vector.load %arg11[%c0_29, %c0_30] : memref<32x16xbf16, #tpu.memory_space<vmem>>, vector<32x16xbf16>
    %cst_31 = arith.constant dense<0.000000e+00> : vector<32x128xf32>
    %40 = tpu.matmul %39, %36, %cst_31 {dimension_numbers = #tpu.dot_dimension_numbers<[1], [0], [0], [1], [0, 0, 1, 1], [], []>} : vector<32x16xbf16>, vector<16x128xbf16>, vector<32x128xf32> -> vector<32x128xf32>
    %41 = arith.truncf %38 : vector<32x128xf32> to vector<32x128xbf16>
    %c0_32 = arith.constant 0 : index
    %c0_33 = arith.constant 0 : index
    %42 = vector.load %arg13[%c0_32, %c0_33] : memref<128x128xbf16, #tpu.memory_space<vmem>>, vector<128x128xbf16>
    %cst_34 = arith.constant dense<0.000000e+00> : vector<32x128xf32>
    %43 = tpu.matmul %41, %42, %cst_34 {dimension_numbers = #tpu.dot_dimension_numbers<[1], [0], [0], [1], [0, 0, 1, 1], [], []>} : vector<32x128xbf16>, vector<128x128xbf16>, vector<32x128xf32> -> vector<32x128xf32>
    %44 = arith.truncf %40 : vector<32x128xf32> to vector<32x128xbf16>
    %c0_35 = arith.constant 0 : index
    %c0_36 = arith.constant 0 : index
    %45 = vector.load %arg14[%c0_35, %c0_36] : memref<128x128xbf16, #tpu.memory_space<vmem>>, vector<128x128xbf16>
    %cst_37 = arith.constant dense<0.000000e+00> : vector<32x128xf32>
    %46 = tpu.matmul %44, %45, %cst_37 {dimension_numbers = #tpu.dot_dimension_numbers<[1], [0], [0], [1], [0, 0, 1, 1], [], []>} : vector<32x128xbf16>, vector<128x128xbf16>, vector<32x128xf32> -> vector<32x128xf32>
    %47 = arith.addf %43, %46 : vector<32x128xf32>
    %c0_38 = arith.constant 0 : index
    %c0_39 = arith.constant 0 : index
    %48 = vector.load %arg12[%c0_38, %c0_39] : memref<32x1xf32, #tpu.memory_space<vmem>>, vector<32x1xf32>
    %49 = vector.extract_strided_slice %47 {offsets = [0, 0], sizes = [32, 64], strides = [1, 1]} : vector<32x128xf32> to vector<32x64xf32>
    %c0_40 = arith.constant 0 : index
    %c0_41 = arith.constant 0 : index
    %50 = vector.load %arg15[%c0_40, %c0_41] : memref<1x64xf32, #tpu.memory_space<vmem>>, vector<1x64xf32>
    %51 = vector.broadcast %48 : vector<32x1xf32> to vector<32x64xf32>
    %52 = vector.broadcast %50 : vector<1x64xf32> to vector<32x64xf32>
    %53 = arith.mulf %51, %52 : vector<32x64xf32>
    %54 = arith.addf %49, %53 : vector<32x64xf32>
    %c0_42 = arith.constant 0 : index
    %c0_43 = arith.constant 0 : index
    %55 = vector.load %arg16[%c0_42, %c0_43] : memref<1x64xf32, #tpu.memory_space<vmem>>, vector<1x64xf32>
    %56 = vector.broadcast %55 : vector<1x64xf32> to vector<32x64xf32>
    %57 = arith.addf %54, %56 : vector<32x64xf32>
    %cst_44 = arith.constant 0.000000e+00 : f32
    %58 = vector.broadcast %cst_44 : f32 to vector<32x64xf32>
    %59 = arith.maximumf %57, %58 : vector<32x64xf32>
    %c0_45 = arith.constant 0 : index
    %c0_46 = arith.constant 0 : index
    %60 = vector.load %arg17[%c0_45, %c0_46] : memref<64x1xf32, #tpu.memory_space<vmem>>, vector<64x1xf32>
    %cst_47 = arith.constant dense<0.000000e+00> : vector<32x1xf32>
    %61 = tpu.matmul %59, %60, %cst_47 {dimension_numbers = #tpu.dot_dimension_numbers<[1], [0], [0], [1], [0, 0, 1, 1], [], []>} : vector<32x64xf32>, vector<64x1xf32>, vector<32x1xf32> -> vector<32x1xf32>
    %62 = arith.addf %0, %2 : f32
    %63 = vector.broadcast %62 : f32 to vector<32x1xf32>
    %64 = arith.addf %61, %63 : vector<32x1xf32>
    %cst_48 = arith.constant 1.000000e+01 : f32
    %65 = vector.broadcast %cst_48 : f32 to vector<32x1xf32>
    %66 = arith.mulf %64, %65 : vector<32x1xf32>
    %67 = math.absf %66 : vector<32x1xf32>
    %cst_49 = arith.constant 0.000000e+00 : f32
    %68 = vector.broadcast %cst_49 : f32 to vector<32x1xf32>
    %69 = arith.subf %68, %67 : vector<32x1xf32>
    %70 = math.exp %69 : vector<32x1xf32>
    %cst_50 = arith.constant 0.000000e+00 : f32
    %71 = vector.broadcast %cst_50 : f32 to vector<32x1xf32>
    %72 = arith.cmpf oge, %66, %71 : vector<32x1xf32>
    %cst_51 = arith.constant 1.000000e+00 : f32
    %73 = vector.broadcast %cst_51 : f32 to vector<32x1xf32>
    %74 = arith.addf %73, %70 : vector<32x1xf32>
    %cst_52 = arith.constant 1.000000e+00 : f32
    %75 = vector.broadcast %cst_52 : f32 to vector<32x1xf32>
    %76 = arith.divf %75, %74 : vector<32x1xf32>
    %cst_53 = arith.constant 1.000000e+00 : f32
    %77 = vector.broadcast %cst_53 : f32 to vector<32x1xf32>
    %78 = arith.addf %77, %70 : vector<32x1xf32>
    %79 = arith.divf %70, %78 : vector<32x1xf32>
    %80 = arith.select %72, %76, %79 : vector<32x1xi1>, vector<32x1xf32>
    %c0_54 = arith.constant 0 : index
    %c0_55 = arith.constant 0 : index
    %81 = vector.load %arg19[%c0_54, %c0_55] : memref<1x64xf32, #tpu.memory_space<vmem>>, vector<1x64xf32>
    %82 = vector.broadcast %0 : f32 to vector<1x64xf32>
    %83 = arith.mulf %82, %81 : vector<1x64xf32>
    %c0_56 = arith.constant 0 : index
    %c0_57 = arith.constant 0 : index
    %84 = vector.load %arg20[%c0_56, %c0_57] : memref<1x64xf32, #tpu.memory_space<vmem>>, vector<1x64xf32>
    %85 = vector.broadcast %1 : f32 to vector<1x64xf32>
    %86 = arith.mulf %85, %84 : vector<1x64xf32>
    %87 = arith.addf %83, %86 : vector<1x64xf32>
    %88 = vector.extract_strided_slice %47 {offsets = [0, 64], sizes = [32, 64], strides = [1, 1]} : vector<32x128xf32> to vector<32x64xf32>
    %89 = vector.broadcast %80 : vector<32x1xf32> to vector<32x64xf32>
    %90 = arith.mulf %89, %88 : vector<32x64xf32>
    %c0_58 = arith.constant 0 : index
    %c0_59 = arith.constant 0 : index
    %91 = vector.load %arg18[%c0_58, %c0_59] : memref<1x64xf32, #tpu.memory_space<vmem>>, vector<1x64xf32>
    %92 = vector.broadcast %48 : vector<32x1xf32> to vector<32x64xf32>
    %93 = vector.broadcast %91 : vector<1x64xf32> to vector<32x64xf32>
    %94 = arith.mulf %92, %93 : vector<32x64xf32>
    %95 = arith.addf %90, %94 : vector<32x64xf32>
    %96 = vector.broadcast %87 : vector<1x64xf32> to vector<32x64xf32>
    %97 = arith.addf %95, %96 : vector<32x64xf32>
    %c0_60 = arith.constant 0 : index
    %c0_61 = arith.constant 0 : index
    %98 = vector.load %arg21[%c0_60, %c0_61] : memref<1x64xf32, #tpu.memory_space<vmem>>, vector<1x64xf32>
    %99 = vector.broadcast %98 : vector<1x64xf32> to vector<32x64xf32>
    %100 = arith.addf %97, %99 : vector<32x64xf32>
    %cst_62 = arith.constant 0.000000e+00 : f32
    %101 = vector.broadcast %cst_62 : f32 to vector<32x64xf32>
    %102 = arith.maximumf %100, %101 : vector<32x64xf32>
    %c0_63 = arith.constant 0 : index
    %c0_64 = arith.constant 0 : index
    %103 = vector.load %arg22[%c0_63, %c0_64] : memref<64x1xf32, #tpu.memory_space<vmem>>, vector<64x1xf32>
    %cst_65 = arith.constant dense<0.000000e+00> : vector<32x1xf32>
    %104 = tpu.matmul %102, %103, %cst_65 {dimension_numbers = #tpu.dot_dimension_numbers<[1], [0], [0], [1], [0, 0, 1, 1], [], []>} : vector<32x64xf32>, vector<64x1xf32>, vector<32x1xf32> -> vector<32x1xf32>
    %105 = vector.broadcast %3 : f32 to vector<32x1xf32>
    %106 = arith.addf %104, %105 : vector<32x1xf32>
    %cst_66 = arith.constant 0.000000e+00 : f32
    %107 = vector.broadcast %cst_66 : f32 to vector<32x1xf32>
    %108 = arith.maximumf %106, %107 : vector<32x1xf32>
    %109 = math.absf %106 : vector<32x1xf32>
    %cst_67 = arith.constant 0.000000e+00 : f32
    %110 = vector.broadcast %cst_67 : f32 to vector<32x1xf32>
    %111 = arith.subf %110, %109 : vector<32x1xf32>
    %112 = math.exp %111 : vector<32x1xf32>
    %113 = math.log1p %112 : vector<32x1xf32>
    %114 = arith.addf %108, %113 : vector<32x1xf32>
    %cst_68 = arith.constant 1.000000e+00 : f32
    %115 = arith.divf %cst_68, %1 : f32
    %116 = vector.broadcast %115 : f32 to vector<32x1xf32>
    %117 = arith.mulf %114, %116 : vector<32x1xf32>
    %cst_69 = arith.constant 0.000000e+00 : f32
    %cst_70 = arith.constant 1.000000e+00 : f32
    %118 = vector.broadcast %cst_69 : f32 to vector<32x1xf32>
    %119 = arith.maximumf %118, %117 : vector<32x1xf32>
    %120 = vector.broadcast %cst_70 : f32 to vector<32x1xf32>
    %121 = arith.minimumf %120, %119 : vector<32x1xf32>
    %122 = tpu.concatenate %121, %80 in 1 : vector<32x1xf32>, vector<32x1xf32> -> vector<32x2xf32>
    %c0_71 = arith.constant 0 : index
    %c0_72 = arith.constant 0 : index
    %123 = vector.load %arg23[%c0_71, %c0_72] : memref<32x2xf32, #tpu.memory_space<vmem>>, vector<32x2xf32>
    tpu.vector_store %arg23[%c0_71, %c0_72], %122 {strides = array<i32>} : memref<32x2xf32, #tpu.memory_space<vmem>>, vector<32x2xf32>,
    return
  }
}

</mosaic_0001>

<bundles_post_ra>
// kernel: gnn_forward.1
= control target key start
LH: loop header
LB: loop body
LE: loop exit
PB: predicated region body
PF: predicated region fallthrough
CT: control target
= control target key end

     0   :  { %s2499_s0 = inlined_call_operand.vmem [shape: f32[2], index: 0, kind: input, shape index: {}]   ;;  %s2500_s1 = inlined_call_operand.vmem [shape: f32[2], index: 1, kind: input, shape index: {}]   ;;  %s2501_s2 = inlined_call_operand.hbm [shape: bf16[16,16], index: 2, kind: input, shape index: {}]   ;;  %s2502_s3 = inlined_call_operand.vmem [shape: f32[16,4], index: 3, kind: input, shape index: {}]   ;;  %s2503_s4 = inlined_call_operand.hbm [shape: bf16[4,128], index: 4, kind: input, shape index: {}]   ;;  %s2504_s5 = inlined_call_operand.hbm [shape: f32[1,128], index: 5, kind: input, shape index: {}]   ;;  %s2505_s6 = inlined_call_operand.vmem [shape: bf16[128,128], index: 6, kind: input, shape index: {}]   ;;  %s2506_s7 = inlined_call_operand.hbm [shape: f32[1,128], index: 7, kind: input, shape index: {}]   ;;  %s2507_s8 = inlined_call_operand.vmem [shape: bf16[128,128], index: 8, kind: input, shape index: {}]   ;;  %s2508_s9 = inlined_call_operand.hbm [shape: f32[1,128], index: 9, kind: input, shape index: {}]   ;;  %s2509_s10 = inlined_call_operand.vmem [shape: bf16[32,16], index: 10, kind: input, shape index: {}]   ;;  %s2510_s11 = inlined_call_operand.vmem [shape: bf16[32,16], index: 11, kind: input, shape index: {}]   ;;  %s2511_s12 = inlined_call_operand.vmem [shape: f32[32,1], index: 12, kind: input, shape index: {}]   ;;  %s2512_s13 = inlined_call_operand.vmem [shape: bf16[128,128], index: 13, kind: input, shape index: {}]   ;;  %s2513_s14 = inlined_call_operand.vmem [shape: bf16[128,128], index: 14, kind: input, shape index: {}]   ;;  %s2514_s15 = inlined_call_operand.vmem [shape: f32[1,64], index: 15, kind: input, shape index: {}]   ;;  %s2515_s16 = inlined_call_operand.vmem [shape: f32[1,64], index: 16, kind: input, shape index: {}]   ;;  %s2516_s17 = inlined_call_operand.vmem [shape: f32[64,1], index: 17, kind: input, shape index: {}]   ;;  %s2517_s18 = inlined_call_operand.vmem [shape: f32[1,64], index: 18, kind: input, shape index: {}]   ;;  %s2518_s19 = inlined_call_operand.vmem [shape: f32[1,64], index: 19, kind: input, shape index: {}]   ;;  %s2519_s20 = inlined_call_operand.vmem [shape: f32[1,64], index: 20, kind: input, shape index: {}]   ;;  %s2520_s21 = inlined_call_operand.vmem [shape: f32[1,64], index: 21, kind: input, shape index: {}]   ;;  %s2521_s22 = inlined_call_operand.vmem [shape: f32[64,1], index: 22, kind: input, shape index: {}]   ;;  %s2522_s23 = inlined_call_operand.vmem [shape: f32[32,2], index: 23, kind: output, shape index: {}]  }
   0x1   :  { %2525 = sst [smem:[#allocation19_spill]] %s2499_s0 }
   0x2   :  { %2526 = sst [smem:[#allocation20_spill]] %s2500_s1 }
   0x3   :  { %2527 = sst [smem:[#allocation21_spill]] %s2501_s2 }
   0x4   :  { %2528 = sst [smem:[#allocation22_spill]] %s2502_s3 }
   0x5   :  { %2529 = sst [smem:[#allocation23_spill]] %s2503_s4 }
   0x6   :  { %2530 = sst [smem:[#allocation24_spill]] %s2504_s5 }
   0x7   :  { %2531 = sst [smem:[#allocation25_spill]] %s2505_s6 }
   0x8   :  { %2532 = sst [smem:[#allocation26_spill]] %s2506_s7 }
   0x9   :  { %28 = vsyncpa [#allocation4], 0 }
   0xa   :  { %29 = vsyncpa [#allocation6], 0 }
   0xb   :  { %30 = vsyncpa [#allocation3], 0 }
   0xc   :  { %31 = vsyncpa [#allocation9], 0 }
   0xd   :  { %32 = vsyncpa [#allocation12], 0  ;;  %s2000_s4 = smov [#allocation8]   ;;  %s2001_s24 = smov [#allocation11]  }
   0xe   :  { %s73_s30 = sshll.u32 %s2000_s4, 4  ;;  %s95_s25 = sshll.u32 %s2001_s24, 4  ;;  %s74_s30 = int_to_ptr.vmem [resolvable:$true] %s73_s30  ;;  %s96_s25 = int_to_ptr.vmem [resolvable:$true] %s95_s25 }
   0xf   :  { %s1874_s5 = scalar_lea.vmem %s74_s30, 32  ;;  %p1879_p1 = scmp.lt.s32.totalorder %s74_s30, %s74_s30 }
  0x10   :  { %p1875_p0 = scmp.ne.s32.totalorder %s74_s30, %s1874_s5  ;;  %p1880_p2 = scmp.lt.s32.totalorder %s1874_s5, %s1874_s5 }
  0x12   :  { %p1881_p3 = por %p1880_p2, %p1879_p1 }
  0x14   :  { %p1882_p4 = pnand %p1881_p3, %p1875_p0 }
  0x16   :  { %1885 = shalt.err (!%p1882_p4)
}
  0x17   :  { %s2533_s2 = sld [smem:[#allocation23_spill]]  ;;  %s1894_s6 = scalar_lea.vmem %s96_s25, 16 }
  0x18   :  { %p1895_p5 = scmp.ne.s32.totalorder %s96_s25, %s1894_s6  ;;  %s1898_s27 = scalar_lea.vmem %s96_s25, 32 }
  0x19   :  { %p1899_p6 = scmp.lt.s32.totalorder %s96_s25, %s96_s25  ;;  %p1900_p7 = scmp.lt.s32.totalorder %s1898_s27, %s1894_s6 }
  0x1b   :  { %p1901_p8 = por %p1900_p7, %p1899_p6 }
  0x1d   :  { %76 = dma.hbm_to_vmem [thread:$0]  %s2533_s2, 32, %s74_s30, [#allocation9]  }
  0x1e   :  { %p1902_p9 = pnand %p1901_p8, %p1895_p5 }
  0x20   :  { %1905 = shalt.err (!%p1902_p9)
}
  0x21   :  { %s2534_s29 = sld [smem:[#allocation26_spill]] }
  0x22   :  { %s2535_s4 = sld [smem:[#allocation19_spill]] }
  0x23   :  { %s2536_s30 = sld [smem:[#allocation20_spill]] }
  0x27   :  { %98 = dma.hbm_to_vmem [thread:$0]  %s2534_s29, 16, %s96_s25, [#allocation12]  }
  0x28   :  { %s39_s24 = sshll.u32 %s2535_s4, 4  ;;  %s40_s24 = int_to_ptr.vmem [resolvable:$true] %s39_s24 }
  0x29   :  { %s49_s26 = sshll.u32 %s2536_s30, 4  ;;  %s1906_s2 = scalar_lea.vmem %s40_s24, 16  ;;  %s50_s26 = int_to_ptr.vmem [resolvable:$true] %s49_s26 }
  0x2a   :  { %p1907_p10 = scmp.ne.s32.totalorder %s40_s24, %s1906_s2  ;;  %p1911_p11 = scmp.lt.s32.totalorder %s40_s24, %s40_s24 }
  0x2b   :  { %p1912_p12 = scmp.lt.s32.totalorder %s1906_s2, %s1906_s2 }
  0x2d   :  { %p1913_p13 = por %p1912_p12, %p1911_p11 }
  0x2f   :  { %p1914_p0 = pnand %p1913_p13, %p1907_p10 }
  0x31   :  { %1917 = shalt.err (!%p1914_p0)
}
  0x32   :  { %s2002_s6 = smov [#allocation2]   ;;  %s1918_s25 = scalar_lea.vmem %s50_s26, 16 }
  0x33   :  { %42 = dma.vmem_to_smem %s40_s24, 16, %s2002_s6, [#allocation4]  }
  0x34   :  { %p1919_p1 = scmp.ne.s32.totalorder %s50_s26, %s1918_s25  ;;  %p1923_p2 = scmp.lt.s32.totalorder %s50_s26, %s50_s26 }
  0x35   :  { %p1924_p3 = scmp.lt.s32.totalorder %s1918_s25, %s1918_s25 }
  0x37   :  { %p1925_p4 = por %p1924_p3, %p1923_p2 }
  0x39   :  { %p1926_p5 = pnand %p1925_p4, %p1919_p1 }
  0x3b   :  { %1929 = shalt.err (!%p1926_p5)
}
  0x3c   :  { %s2003_s27 = smov [#allocation5]   ;;  %s2004_s7 = smov [#allocation7]  }
  0x3d   :  { %52 = dma.vmem_to_smem %s50_s26, 16, %s2003_s27, [#allocation6]  }
  0x3e   :  { %s58_s28 = sshll.u32 %s2004_s7, 4  ;;  %s59_s28 = int_to_ptr.vmem [resolvable:$true] %s58_s28 }
  0x3f   :  { %s1938_s29 = scalar_lea.vmem %s59_s28, 128  ;;  %p1943_p7 = scmp.lt.s32.totalorder %s59_s28, %s59_s28 }
  0x40   :  { %p1939_p6 = scmp.ne.s32.totalorder %s59_s28, %s1938_s29  ;;  %p1944_p8 = scmp.lt.s32.totalorder %s1938_s29, %s1938_s29 }
  0x42   :  { %p1945_p9 = por %p1944_p8, %p1943_p7 }
  0x44   :  { %p1946_p10 = pnand %p1945_p9, %p1939_p6 }
  0x46   :  { %1949 = shalt.err (!%p1946_p10)
}
  0x47   :  { %s2005_s3 = smov 64   ;;  %s2006_s0 = smov 4  }
  0x48   :  { %s2537_s5 = sld [smem:[#allocation21_spill]]  ;;  %s2007_s1 = smov [#allocation10]  }
  0x49   :  { %s83_s30 = sshll.u32 %s2007_s1, 4  ;;  %s2008_s26 = smov [#allocation13]   ;;  %s84_s30 = int_to_ptr.vmem [resolvable:$true] %s83_s30 }
  0x4a   :  { %s107_s2 = sshll.u32 %s2008_s26, 4  ;;  %s1958_s6 = scalar_lea.vmem %s84_s30, 16  ;;  %s108_s2 = int_to_ptr.vmem [resolvable:$true] %s107_s2 }
  0x4b   :  { %p1959_p11 = scmp.ne.s32.totalorder %s84_s30, %s1958_s6  ;;  %s1962_s25 = scalar_lea.vmem %s84_s30, 32 }
  0x4c   :  { %p1963_p12 = scmp.lt.s32.totalorder %s84_s30, %s84_s30  ;;  %p1964_p13 = scmp.lt.s32.totalorder %s1962_s25, %s1958_s6 }
  0x4e   :  { %64 = dma.hbm_to_vmem [thread:$0]  %s2537_s5, 128, %s59_s28, [#allocation3], %s2005_s3, %s2005_s3, %s2006_s0  }
  0x4f   :  { %p1965_p0 = por %p1964_p13, %p1963_p12 }
  0x51   :  { %p1966_p1 = pnand %p1965_p0, %p1959_p11 }
  0x53   :  { %1969 = shalt.err (!%p1966_p1)
}
  0x54   :  { %s2538_s29 = sld [smem:[#allocation24_spill]]  ;;  %s1978_s4 = scalar_lea.vmem %s108_s2, 16 }
  0x55   :  { %p1979_p2 = scmp.ne.s32.totalorder %s108_s2, %s1978_s4  ;;  %s1982_s28 = scalar_lea.vmem %s108_s2, 32 }
  0x56   :  { %p1983_p3 = scmp.lt.s32.totalorder %s108_s2, %s108_s2  ;;  %p1984_p4 = scmp.lt.s32.totalorder %s1982_s28, %s1978_s4 }
  0x58   :  { %p1985_p5 = por %p1984_p4, %p1983_p3 }
  0x5a   :  { %86 = dma.hbm_to_vmem [thread:$0]  %s2538_s29, 16, %s84_s30, [#allocation9]  }
  0x5b   :  { %p1986_p6 = pnand %p1985_p5, %p1979_p2 }
  0x5d   :  { %1989 = shalt.err (!%p1986_p6)
}
  0x5e   :  { %110 = dma.hbm_to_vmem [thread:$0]  %s2508_s9, 16, %s108_s2, [#allocation12]  }
  0x5f   :  { %1990 = dma.done.wait [#allocation4], 16  }
  0x60   :  { %1991 = vsyncadd [#allocation4], 4294967280 }
  0x61   :  { %1992 = dma.done.wait [#allocation6], 16  }
  0x62   :  { %1993 = vsyncadd [#allocation6], 4294967280 }
  0x63   :  { %1994 = dma.done.wait [#allocation3], 128  }
  0x64   :  { %1995 = vsyncadd [#allocation3], 4294967168 }
  0x65   :  { %1996 = dma.done.wait [#allocation9], 48  }
  0x66   :  { %1997 = vsyncadd [#allocation9], 4294967248 }
  0x67   :  { %1998 = dma.done.wait [#allocation12], 32  }
  0x68   :  { %1999 = vsyncadd [#allocation12], 4294967264 }
  0x69   :  { %158 = sfence }
  0x6a   :  { %v169_v0 = vld [vmem:[#allocation8] sm:$0x3]  ;;  %vm174_vm0 = vcmask 1041408   ;;  %s2539_s30 = sld [smem:[#allocation22_spill]]  ;;  %v2009_v2 = vmov 0.0   ;;  %vm2010_vm1 = vmmov 0  }
  0x6b   :  { %1618 = vmatprep.subr.bf16.mxu0 %v2009_v2  ;;  %v176_v3 = vsel %vm174_vm0, %v169_v0, 0  ;;  %1620 = vmatprep.mubr.msk.bf16.mxu0 %vm2010_vm1, %v2009_v2  ;;  %vm170_vm2 = vcmask 31744   ;;  %s2540_s25 = sld [smem:[#allocation25_spill]]  ;;  %v2191_v16 = vld [vmem:[#allocation7] sm:$0xff]   ;;  %vm232_vm3 = vcmask 130048   ;;  %v1804_v35 = vld [vmem:[%s2507_s8 + $0x38] sm:$0xff]  }
  0x6c   :  { %1619 = vmatpush3.bf16.msra.mxu0 %v176_v3  ;;  %1624 = vmatprep.subr.bf16.mxu1 %v2009_v2  ;;  %v1483_v20 = vld [vmem:[#allocation10] ss:$0 sm:$0xff]  ;;  %v1805_v36 = vld [vmem:[%s2507_s8 + $0x30] sm:$0xff]   ;;  %v1807_v38 = vld [vmem:[%s2507_s8 + $0x20] sm:$0xff]   ;;  %s2331_s26 = sld [smem:[#allocation2 + $0x1]]  ;;  %vm1026_vm4 = vcmask 523264  }
  0x6d   :  { %1626 = vmatprep.mubr.msk.bf16.mxu1 %vm2010_vm1, %v2009_v2  ;;  %1630 = vmatprep.subr.bf16.mxu0 %v2009_v2  ;;  %v1806_v37 = vld [vmem:[%s2507_s8 + $0x28] sm:$0xff]   ;;  %v1808_v39 = vld [vmem:[%s2507_s8 + $0x18] sm:$0xff]   ;;  %v1809_v40 = vld [vmem:[%s2507_s8 + $0x10] sm:$0xff]   ;;  %vm1461_vm13 = vcmask 7168   ;;  %vm1466_vm14 = vcmask 15360  }
  0x6e   :  { %v1810_v41 = vld [vmem:[%s2507_s8 + $0x8] sm:$0xff]   ;;  %v1811_v42 = vld [vmem:[%s2507_s8] sm:$0xff]  }
  0x6f   :  { %v1494_v43 = vld [vmem:[#allocation11] ss:$0 sm:$0xff]  ;;  %v1812_v58 = vld [vmem:[%s2509_s10] sm:$0xff]   ;;  %v1504_v60 = vld [vmem:[#allocation13] ss:$0 sm:$0xff] }
  0x70   :  { %v166_v1 = vld [vmem:[%s2539_s30] sm:$0xff]  ;;  %v167_v4 = vld [vmem:[%s2539_s30 + $0x8] sm:$0xff] }
  0x71   :  { %v168_v5 = vpack.c.bf16 %v167_v4, %v166_v1  ;;  %v1796_v6 = vld [vmem:[%s2540_s25 + $0x38] sm:$0xff]   ;;  %v1797_v7 = vld [vmem:[%s2540_s25 + $0x30] sm:$0xff]   ;;  %v1798_v8 = vld [vmem:[%s2540_s25 + $0x28] sm:$0xff]  }
  0x72   :  { %v1799_v9 = vld [vmem:[%s2540_s25 + $0x20] sm:$0xff]   ;;  %v1800_v10 = vld [vmem:[%s2540_s25 + $0x18] sm:$0xff]   ;;  %v1801_v17 = vld [vmem:[%s2540_s25 + $0x10] sm:$0xff]  }
  0x73   :  { %1621 = vmatmul.mubr.msk.bf16.vlgmr.msra.gmra.mxu0 %vm170_vm2, %v168_v5  ;;  %v1802_v18 = vld [vmem:[%s2540_s25 + $0x8] sm:$0xff]   ;;  %v1803_v19 = vld [vmem:[%s2540_s25] sm:$0xff]  }
  0x74   :  { %1646 = vmatprep.mubr.msk.bf16.mxu0 %vm2010_vm1, %v2009_v2  ;;  %1631 = vmatpush3.bf16.msra.mxu0 %v1796_v6  ;;  %v1813_v59 = vld [vmem:[%s2510_s11] sm:$0xff]   ;;  %v1816_v6 = vld [vmem:[%s2513_s14 + $0x38] sm:$0xff]  }
  0x75   :  { %1632 = vmatprep.subr.bf16.mxu0 %v2009_v2 }
  0x78   :  { %1633 = vmatpush3.bf16.msra.mxu0 %v1797_v7  ;;  %v1817_v7 = vld [vmem:[%s2512_s13 + $0x38] sm:$0xff]  }
  0x79   :  { %1634 = vmatprep.subr.bf16.mxu0 %v2009_v2 }
  0x7c   :  { %1635 = vmatpush3.bf16.msra.mxu0 %v1798_v8  ;;  %v1814_v8 = vld [vmem:[%s2509_s10 + $0x8] sm:$0xff]  }
  0x7d   :  { %1636 = vmatprep.subr.bf16.mxu0 %v2009_v2 }
  0x80   :  { %1637 = vmatpush3.bf16.msra.mxu0 %v1799_v9  ;;  %v1815_v9 = vld [vmem:[%s2510_s11 + $0x8] sm:$0xff]  }
  0x81   :  { %1638 = vmatprep.subr.bf16.mxu0 %v2009_v2 }
  0x84   :  { %1639 = vmatpush3.bf16.msra.mxu0 %v1800_v10  ;;  %v1818_v10 = vld [vmem:[%s2513_s14 + $0x30] sm:$0xff]  }
  0x85   :  { %1640 = vmatprep.subr.bf16.mxu0 %v2009_v2 }
  0x88   :  { %1641 = vmatpush3.bf16.msra.mxu0 %v1801_v17  ;;  %v1825_v17 = vld [vmem:[%s2512_s13 + $0x18] sm:$0xff]  }
  0x89   :  { %1642 = vmatprep.subr.bf16.mxu0 %v2009_v2 }
  0x8c   :  { %1643 = vmatpush3.bf16.msra.mxu0 %v1802_v18  ;;  %v1826_v18 = vld [vmem:[%s2513_s14 + $0x10] sm:$0xff]  }
  0x8d   :  { %1644 = vmatprep.subr.bf16.mxu0 %v2009_v2 }
  0x90   :  { %1645 = vmatpush3.bf16.msra.mxu0 %v1803_v19  ;;  %v1827_v19 = vld [vmem:[%s2512_s13 + $0x10] sm:$0xff]  }
  0x91   :  { %1676 = vmatprep.subr.bf16.mxu0 %v2009_v2 }
 0x133   :  { %v212_v11 = vpop.f32.mrf.mxu0 }
 0x135   :  { %v1622_v12 = vpop.f32.mrf.mxu0 }
 0x136   :  { %v1820_v12 = vld [vmem:[%s2513_s14 + $0x28] sm:$0xff]  }
 0x137   :  { %v215_v13 = vpop.f32.mrf.mxu0 }
 0x138   :  { %v219_v14 = vpack.c.bf16 %v215_v13, %v212_v11  ;;  %v1819_v11 = vld [vmem:[%s2512_s13 + $0x30] sm:$0xff]   ;;  %v1821_v13 = vld [vmem:[%s2512_s13 + $0x28] sm:$0xff]  }
 0x139   :  { %v1623_v15 = vpop.f32.mrf.mxu0 }
 0x13a   :  { %1625 = vmatpush3.bf16.msra.mxu1 %v219_v14  ;;  %v1822_v14 = vld [vmem:[%s2513_s14 + $0x20] sm:$0xff]  }
 0x13b   :  { %1650 = vmatprep.subr.bf16.mxu1 %v2009_v2  ;;  %v1823_v15 = vld [vmem:[%s2512_s13 + $0x20] sm:$0xff]  }
 0x13d   :  { %1627 = vmatmul.mubr.msk.bf16.vlgmr.msra.gmra.mxu1 %vm232_vm3, %v2191_v16 }
 0x13e   :  { %1652 = vmatprep.mubr.msk.bf16.mxu1 %vm2010_vm1, %v2009_v2 }
 0x1fd   :  { %v270_v21 = vpop.f32.mrf.mxu1 }
 0x1fe   :  { %v271_v23 = vadd.f32 %v1483_v20, %v270_v21  ;;  %v1829_v21 = vld [vmem:[%s2512_s13 + $0x8] sm:$0xff]  }
 0x1ff   :  { %v1628_v22 = vpop.f32.mrf.mxu1 }
 0x200   :  { %v277_v27 = vmax.f32 %v271_v23, 0.0  ;;  %v1830_v22 = vld [vmem:[%s2513_s14] sm:$0xff]  }
 0x201   :  { %v273_v24 = vpop.f32.mrf.mxu1  ;;  %v1831_v23 = vld [vmem:[%s2512_s13] sm:$0xff]  }
 0x202   :  { %v274_v25 = vadd.f32 %v1483_v20, %v273_v24  ;;  %v1828_v20 = vld [vmem:[%s2513_s14 + $0x8] sm:$0xff]   ;;  %v964_v24 = vld [vmem:[%s2511_s12 + $0x10] sm:$0xff] }
 0x203   :  { %v1629_v26 = vpop.f32.mrf.mxu1 }
 0x204   :  { %v278_v28 = vmax.f32 %v274_v25, 0.0  ;;  %v962_v25 = vld [vmem:[%s2511_s12] sm:$0xff]  ;;  %v2011_v26 = vmov 0  }
 0x205   :  { %1794 = vset.pattern.permute.xlu1 %v2011_v26  ;;  %1793 = vset.pattern.permute.xlu0 %v2011_v26 }
 0x206   :  { %v279_v29 = vpack.c.bf16 %v278_v28, %v277_v27  ;;  %v1023_v27 = vld [vmem:[%s2516_s17 + $0x38] sm:$0xff]  ;;  %979 = vperm.xlu1 %1794, %v964_v24   ;;  %969 = vperm.xlu0 %1793, %v962_v25  }
 0x207   :  { %v965_v28 = vld [vmem:[%s2511_s12 + $0x18] sm:$0xff] }
 0x208   :  { %1647 = vmatmul.mubr.bf16.vlgmr.msra.gmra.mxu0 %v279_v29  ;;  %v963_v29 = vld [vmem:[%s2511_s12 + $0x8] sm:$0xff]  ;;  %s2329_s12 = sld [smem:[#allocation2]] }
 0x209   :  { %1678 = vmatprep.mubr.msk.bf16.mxu0 %vm2010_vm1, %v2009_v2 }
 0x20a   :  { %984 = vperm.xlu1 %1794, %v965_v28   ;;  %974 = vperm.xlu0 %1793, %v963_v29  }
 0x2c8   :  { %v378_v30 = vpop.f32.mrf.mxu0 }
 0x2ca   :  { %v1648_v31 = vpop.f32.mrf.mxu0 }
 0x2cc   :  { %v381_v32 = vpop.f32.mrf.mxu0 }
 0x2cd   :  { %v385_v33 = vpack.c.bf16 %v381_v32, %v378_v30 }
 0x2ce   :  { %v1649_v34 = vpop.f32.mrf.mxu0 }
 0x2cf   :  { %1651 = vmatpush3.bf16.msra.mxu1 %v385_v33 }
 0x2d0   :  { %1656 = vmatprep.subr.bf16.mxu1 %v2009_v2 }
 0x2d2   :  { %1653 = vmatmul.mubr.msk.bf16.vlgmr.msra.gmra.mxu1 %vm232_vm3, %v2191_v16 }
 0x2d3   :  { %1657 = vmatpush3.bf16.msra.mxu1 %v1804_v35  ;;  %1672 = vmatprep.mubr.msk.bf16.mxu1 %vm2010_vm1, %v2009_v2 }
 0x2d4   :  { %1658 = vmatprep.subr.bf16.mxu1 %v2009_v2 }
 0x2d7   :  { %1659 = vmatpush3.bf16.msra.mxu1 %v1805_v36 }
 0x2d8   :  { %1660 = vmatprep.subr.bf16.mxu1 %v2009_v2 }
 0x2db   :  { %1661 = vmatpush3.bf16.msra.mxu1 %v1806_v37 }
 0x2dc   :  { %1662 = vmatprep.subr.bf16.mxu1 %v2009_v2 }
 0x2df   :  { %1663 = vmatpush3.bf16.msra.mxu1 %v1807_v38 }
 0x2e0   :  { %1664 = vmatprep.subr.bf16.mxu1 %v2009_v2 }
 0x2e3   :  { %1665 = vmatpush3.bf16.msra.mxu1 %v1808_v39 }
 0x2e4   :  { %1666 = vmatprep.subr.bf16.mxu1 %v2009_v2 }
 0x2e7   :  { %1667 = vmatpush3.bf16.msra.mxu1 %v1809_v40 }
 0x2e8   :  { %1668 = vmatprep.subr.bf16.mxu1 %v2009_v2 }
 0x2eb   :  { %1669 = vmatpush3.bf16.msra.mxu1 %v1810_v41 }
 0x2ec   :  { %1670 = vmatprep.subr.bf16.mxu1 %v2009_v2 }
 0x2ef   :  { %1671 = vmatpush3.bf16.msra.mxu1 %v1811_v42  ;;  %v1231_v42 = vlaneseq }
 0x392   :  { %v427_v44 = vpop.f32.mrf.mxu1 }
 0x393   :  { %v428_v46 = vadd.f32 %v1494_v43, %v427_v44  ;;  %v1169_v44 = vstv %s2329_s12 }
 0x394   :  { %v1654_v45 = vpop.f32.mrf.mxu1 }
 0x395   :  { %v434_v50 = vmax.f32 %v428_v46, 0.0  ;;  %v1171_v45 = vld [vmem:[%s2519_s20] sm:$0x1] }
 0x396   :  { %v430_v47 = vpop.f32.mrf.mxu1 }
 0x397   :  { %v431_v48 = vadd.f32 %v1494_v43, %v430_v47  ;;  %v1168_v43 = vld [vmem:[%s2518_s19] sm:$0x1]  ;;  %v1172_v47 = vstv %s2331_s26 }
 0x398   :  { %v1655_v49 = vpop.f32.mrf.mxu1  ;;  %v1170_v46 = vmul.f32 %v1169_v44, %v1168_v43 }
 0x399   :  { %v435_v51 = vmax.f32 %v431_v48, 0.0  ;;  %v1232_v48 = vshrl.u32 %v1231_v42, 7  ;;  %v1173_v49 = vmul.f32 %v1172_v47, %v1171_v45 }
 0x39b   :  { %v436_v52 = vpack.c.bf16 %v435_v51, %v434_v50  ;;  %v1233_v50 = vsub.s32 0, %v1232_v48  ;;  %v970_v51 = vpop.permute.xlu0 %969 }
 0x39d   :  { %1673 = vmatmul.mubr.bf16.vlgmr.msra.gmra.mxu1 %v436_v52  ;;  %v1174_v52 = vadd.f32 %v1173_v49, %v1170_v46 }
 0x39e   :  { %1690 = vmatprep.mubr.msk.bf16.mxu1 %vm232_vm3, %v1813_v59 }
 0x45d   :  { %v535_v53 = vpop.f32.mrf.mxu1 }
 0x45f   :  { %v1674_v54 = vpop.f32.mrf.mxu1 }
 0x460   :  { %v1234_v54 = vrot.slane %v1174_v52, %v1233_v50 }
 0x461   :  { %v538_v55 = vpop.f32.mrf.mxu1 }
 0x462   :  { %v542_v56 = vpack.c.bf16 %v538_v55, %v535_v53  ;;  %v1022_v53 = vld [vmem:[%s2516_s17 + $0x30] sm:$0xff]  ;;  %v1021_v55 = vld [vmem:[%s2516_s17 + $0x28] sm:$0xff]  ;;  %1235 = vrot.lane.b32.xlu0 %v1234_v54, %s2005_s3 }
 0x463   :  { %v1675_v57 = vpop.f32.mrf.mxu1 }
 0x464   :  { %1677 = vmatpush3.bf16.msra.mxu0 %v542_v56  ;;  %v975_v56 = vpop.permute.xlu0 %974  ;;  %v2353_v57 = vld [vmem:[%s2517_s18] ss:$0 sm:$0xff] }
 0x465   :  { %v1206_v59 = vmul.f32 %v2353_v57, %v970_v51 }
 0x467   :  { %1679 = vmatmul.mubr.msk.bf16.vlgmr.msra.gmra.mxu0 %vm232_vm3, %v2191_v16  ;;  %v1824_v16 = vld [vmem:[%s2513_s14 + $0x18] sm:$0xff]   ;;  %1214 = vrot.lane.b32.xlu0 %v1206_v59, %s2005_s3 }
 0x468   :  { %1684 = vmatprep.mubr.msk.bf16.mxu0 %vm232_vm3, %v1812_v58  ;;  %v1207_v58 = vmul.f32 %v2353_v57, %v975_v56 }
 0x46a   :  { %1216 = vrot.lane.b32.xlu1 %v1207_v58, %s2005_s3 }
 0x527   :  { %v584_v61 = vpop.f32.mrf.mxu0 }
 0x528   :  { %v585_v63 = vadd.f32 %v1504_v60, %v584_v61  ;;  %v1019_v61 = vld [vmem:[%s2516_s17 + $0x18] sm:$0xff] }
 0x529   :  { %v1680_v62 = vpop.f32.mrf.mxu0 }
 0x52a   :  { %v591_v3 = vmax.f32 %v585_v63, 0.0  ;;  %v1018_v62 = vld [vmem:[%s2516_s17 + $0x10] sm:$0xff]  ;;  %v1017_v63 = vld [vmem:[%s2516_s17 + $0x8] sm:$0xff] }
 0x52b   :  { %v587_v0 = vpop.f32.mrf.mxu0 }
 0x52c   :  { %v588_v1 = vadd.f32 %v1504_v60, %v587_v0  ;;  %v1020_v60 = vld [vmem:[%s2516_s17 + $0x20] sm:$0xff] }
 0x52d   :  { %v1681_v2 = vpop.f32.mrf.mxu0  ;;  %v1016_v0 = vld [vmem:[%s2516_s17] sm:$0xff] }
 0x52e   :  { %v592_v4 = vmax.f32 %v588_v1, 0.0  ;;  %v2374_v1 = vpop.permute.xlu1 %979  ;;  %v1530_v2 = vld [vmem:[%s2514_s15] ss:$0 sm:$0xff] }
 0x530   :  { %v593_v5 = vpack.c.bf16 %v592_v4, %v591_v3 }
 0x532   :  { %1682 = vmatprep.subr.bf16.mxu0 %v593_v5  ;;  %1688 = vmatprep.subr.bf16.mxu1 %v593_v5 }
 0x533   :  { %1683 = vmatpush3.bf16.msra.mxu0 %v593_v5  ;;  %1689 = vmatpush3.bf16.msra.mxu1 %v593_v5  ;;  %v993_v5 = vmul.f32 %v1530_v2, %v970_v51 }
 0x534   :  { %1694 = vmatprep.subr.bf16.mxu0 %v1816_v6  ;;  %1714 = vmatprep.subr.bf16.mxu1 %v1817_v7 }
 0x536   :  { %1685 = vmatmul.mubr.msk.bf16.vlgmr.msra.gmra.mxu0 %vm232_vm3, %v1814_v8  ;;  %1691 = vmatmul.mubr.msk.bf16.vlgmr.msra.gmra.mxu1 %vm232_vm3, %v1815_v9 }
 0x537   :  { %1695 = vmatpush3.bf16.msra.mxu0 %v1816_v6  ;;  %1715 = vmatpush3.bf16.msra.mxu1 %v1817_v7  ;;  %v2379_v6 = vpop.permute.xlu1 %984  ;;  %v995_v7 = vmul.f32 %v1530_v2, %v2374_v1 }
 0x538   :  { %1696 = vmatprep.subr.bf16.mxu0 %v1818_v10  ;;  %1716 = vmatprep.subr.bf16.mxu1 %v1819_v11 }
 0x53b   :  { %1697 = vmatpush3.bf16.msra.mxu0 %v1818_v10  ;;  %1717 = vmatpush3.bf16.msra.mxu1 %v1819_v11 }
 0x53c   :  { %1698 = vmatprep.subr.bf16.mxu0 %v1820_v12  ;;  %1718 = vmatprep.subr.bf16.mxu1 %v1821_v13 }
 0x53f   :  { %1699 = vmatpush3.bf16.msra.mxu0 %v1820_v12  ;;  %1719 = vmatpush3.bf16.msra.mxu1 %v1821_v13 }
 0x540   :  { %1700 = vmatprep.subr.bf16.mxu0 %v1822_v14  ;;  %1720 = vmatprep.subr.bf16.mxu1 %v1823_v15 }
 0x543   :  { %1701 = vmatpush3.bf16.msra.mxu0 %v1822_v14  ;;  %1721 = vmatpush3.bf16.msra.mxu1 %v1823_v15  ;;  %v996_v15 = vmul.f32 %v1530_v2, %v2379_v6 }
 0x544   :  { %1702 = vmatprep.subr.bf16.mxu0 %v1824_v16  ;;  %1722 = vmatprep.subr.bf16.mxu1 %v1825_v17 }
 0x547   :  { %1703 = vmatpush3.bf16.msra.mxu0 %v1824_v16  ;;  %1723 = vmatpush3.bf16.msra.mxu1 %v1825_v17 }
 0x548   :  { %1704 = vmatprep.subr.bf16.mxu0 %v1826_v18  ;;  %1724 = vmatprep.subr.bf16.mxu1 %v1827_v19 }
 0x54b   :  { %1705 = vmatpush3.bf16.msra.mxu0 %v1826_v18  ;;  %1725 = vmatpush3.bf16.msra.mxu1 %v1827_v19  ;;  %v1531_v18 = vld [vmem:[%s2515_s16] ss:$0 sm:$0xff]  ;;  %s162_s16 = sld [smem:[#allocation5]] }
 0x54c   :  { %1706 = vmatprep.subr.bf16.mxu0 %v1828_v20  ;;  %1726 = vmatprep.subr.bf16.mxu1 %v1829_v21 }
 0x54f   :  { %1707 = vmatpush3.bf16.msra.mxu0 %v1828_v20  ;;  %1727 = vmatpush3.bf16.msra.mxu1 %v1829_v21 }
 0x550   :  { %1708 = vmatprep.subr.bf16.mxu0 %v1830_v22  ;;  %1728 = vmatprep.subr.bf16.mxu1 %v1831_v23 }
 0x551   :  { %s1024_s2 = sadd.f32 %s162_s16, %s2329_s12 }
 0x553   :  { %1709 = vmatpush3.bf16.msra.mxu0 %v1830_v22  ;;  %1729 = vmatpush3.bf16.msra.mxu1 %v1831_v23  ;;  %v994_v22 = vmul.f32 %v1530_v2, %v975_v56 }
 0x554   :  { %1734 = vmatprep.subr.mxu0 %v1023_v27 }
 0x5f6   :  { %v1686_v30 = vpop.f32.mrf.mxu0  ;;  %v1692_v31 = vpop.f32.mrf.mxu1 }
 0x5f8   :  { %v648_v32 = vpop.f32.mrf.mxu0  ;;  %v717_v33 = vpop.f32.mrf.mxu1 }
 0x5fa   :  { %v1687_v34 = vpop.f32.mrf.mxu0  ;;  %v1693_v35 = vpop.f32.mrf.mxu1 }
 0x5fb   :  { %v733_v40 = vpack.c.bf16 %v1687_v34, %v1686_v30  ;;  %v751_v41 = vpack.c.bf16 %v1693_v35, %v1692_v31 }
 0x5fc   :  { %v651_v36 = vpop.f32.mrf.mxu0  ;;  %v720_v37 = vpop.f32.mrf.mxu1 }
 0x5fd   :  { %v732_v38 = vpack.c.bf16 %v651_v36, %v648_v32  ;;  %v750_v39 = vpack.c.bf16 %v720_v37, %v717_v33  ;;  %v1025_v33 = vstv %s1024_s2 }
 0x5ff   :  { %1710 = vmatprep.mubr.bf16.mxu0 %v750_v39  ;;  %1730 = vmatprep.mubr.bf16.mxu1 %v732_v38 }
 0x600   :  { %1711 = vmatmul.mubr.bf16.vlgmr.msra.gmra.mxu0 %v751_v41  ;;  %1731 = vmatmul.mubr.bf16.vlgmr.msra.gmra.mxu1 %v733_v40 }
 0x601   :  { %1735 = vmatpush3.msra.mxu0 %v1023_v27 }
 0x602   :  { %1736 = vmatprep.subr.mxu0 %v1022_v53 }
 0x603   :  { %1737 = vmatpush3.msra.mxu0 %v1022_v53 }
 0x604   :  { %1738 = vmatprep.subr.mxu0 %v1021_v55 }
 0x605   :  { %1739 = vmatpush3.msra.mxu0 %v1021_v55 }
 0x606   :  { %1740 = vmatprep.subr.mxu0 %v1020_v60 }
 0x607   :  { %1741 = vmatpush3.msra.mxu0 %v1020_v60 }
 0x608   :  { %1742 = vmatprep.subr.mxu0 %v1019_v61 }
 0x609   :  { %1743 = vmatpush3.msra.mxu0 %v1019_v61 }
 0x60a   :  { %1744 = vmatprep.subr.mxu0 %v1018_v62 }
 0x60b   :  { %1745 = vmatpush3.msra.mxu0 %v1018_v62 }
 0x60c   :  { %1746 = vmatprep.subr.mxu0 %v1017_v63 }
 0x60d   :  { %1747 = vmatpush3.msra.mxu0 %v1017_v63 }
 0x60e   :  { %1748 = vmatprep.subr.mxu0 %v1016_v0 }
 0x60f   :  { %1749 = vmatpush3.msra.mxu0 %v1016_v0 }
 0x6c0   :  { %v1712_v3 = vpop.f32.mrf.mxu0  ;;  %v1732_v4 = vpop.f32.mrf.mxu1 }
 0x6c1   :  { %v2382_v8 = vadd.f32 %v1732_v4, %v1712_v3 }
 0x6c2   :  { %v850_v9 = vpop.f32.mrf.mxu0  ;;  %v947_v10 = vpop.f32.mrf.mxu1 }
 0x6c3   :  { %v2384_v11 = vadd.f32 %v947_v10, %v850_v9  ;;  %v999_v17 = vadd.f32 %v995_v7, %v2382_v8 }
 0x6c4   :  { %v1713_v12 = vpop.f32.mrf.mxu0  ;;  %v1733_v13 = vpop.f32.mrf.mxu1 }
 0x6c5   :  { %v997_v14 = vadd.f32 %v993_v5, %v2384_v11  ;;  %v2388_v16 = vadd.f32 %v1733_v13, %v1713_v12  ;;  %v1010_v27 = vadd.f32 %v1531_v18, %v999_v17 }
 0x6c6   :  { %v853_v19 = vpop.f32.mrf.mxu0  ;;  %v950_v20 = vpop.f32.mrf.mxu1 }
 0x6c7   :  { %v1008_v21 = vadd.f32 %v1531_v18, %v997_v14  ;;  %v2394_v23 = vadd.f32 %v950_v20, %v853_v19  ;;  %v1000_v25 = vadd.f32 %v996_v15, %v2388_v16  ;;  %v1014_v31 = vmax.f32 %v1010_v27, 0.0  ;;  %v1261_v27 = vld [vmem:[%s2521_s22 + $0x10] sm:$0xff] }
 0x6c9   :  { %v1012_v24 = vmax.f32 %v1008_v21, 0.0  ;;  %v998_v26 = vadd.f32 %v994_v22, %v2394_v23  ;;  %v1011_v29 = vadd.f32 %v1531_v18, %v1000_v25  ;;  %v1208_v21 = vmul.f32 %v2353_v57, %v2374_v1  ;;  %v1537_v22 = vld [vmem:[%s2520_s21] ss:$0 sm:$0xff]  ;;  %v1266_v25 = vld [vmem:[%s2521_s22 + $0x38] sm:$0xff]  ;;  %v1265_v1 = vld [vmem:[%s2521_s22 + $0x30] sm:$0xff] }
 0x6ca   :  { %1756 = vmatprep.subr.mxu1 %v1266_v25 }
 0x6cb   :  { %v1009_v28 = vadd.f32 %v1531_v18, %v998_v26  ;;  %1750 = vmatprep.mubr.msk.f32.mxu0 %vm1026_vm4, %v1012_v24  ;;  %v1015_v32 = vmax.f32 %v1011_v29, 0.0  ;;  %v1209_v24 = vmul.f32 %v2353_v57, %v2379_v6  ;;  %1757 = vmatpush3.msra.mxu1 %v1266_v25  ;;  %v1264_v26 = vld [vmem:[%s2521_s22 + $0x28] sm:$0xff]  ;;  %v1263_v57 = vld [vmem:[%s2521_s22 + $0x20] sm:$0xff]  ;;  %v1262_v6 = vld [vmem:[%s2521_s22 + $0x18] sm:$0xff] }
 0x6cc   :  { %1758 = vmatprep.subr.mxu1 %v1265_v1  ;;  %v1259_v29 = vld [vmem:[%s2521_s22] sm:$0xff] }
 0x6cd   :  { %v1013_v30 = vmax.f32 %v1009_v28, 0.0  ;;  %1759 = vmatpush3.msra.mxu1 %v1265_v1  ;;  %v1260_v28 = vld [vmem:[%s2521_s22 + $0x8] sm:$0xff]  ;;  %s2012_s22 = smov 1  }
 0x6ce   :  { %1760 = vmatprep.subr.mxu1 %v1264_v26 }
 0x6cf   :  { %1751 = vmatmul.mubr.msk.f32.vlgmr.msra.gmra.mxu0 %vm1026_vm4, %v1013_v30  ;;  %1761 = vmatpush3.msra.mxu1 %v1264_v26  ;;  %v1236_v30 = vpop.permute.xlu0 %1235 }
 0x6d0   :  { %1753 = vmatprep.mubr.msk.f32.mxu0 %vm1026_vm4, %v1014_v31  ;;  %1762 = vmatprep.subr.mxu1 %v1263_v57  ;;  %v1217_v31 = vpop.permute.xlu1 %1216 }
 0x6d1   :  { %1763 = vmatpush3.msra.mxu1 %v1263_v57 }
 0x6d2   :  { %1764 = vmatprep.subr.mxu1 %v1262_v6 }
 0x6d3   :  { %1754 = vmatmul.mubr.msk.f32.gmra.mxu0 %vm1026_vm4, %v1015_v32  ;;  %1765 = vmatpush3.msra.mxu1 %v1262_v6  ;;  %v1215_v32 = vpop.permute.xlu0 %1214 }
 0x6d4   :  { %1766 = vmatprep.subr.mxu1 %v1261_v27 }
 0x6d5   :  { %1767 = vmatpush3.msra.mxu1 %v1261_v27 }
 0x6d6   :  { %1768 = vmatprep.subr.mxu1 %v1260_v28 }
 0x6d7   :  { %1769 = vmatpush3.msra.mxu1 %v1260_v28 }
 0x6d8   :  { %1770 = vmatprep.subr.mxu1 %v1259_v29 }
 0x6d9   :  { %1771 = vmatpush3.msra.mxu1 %v1259_v29 }
 0x78f   :  { %v1752_v34 = vpop.f32.mrf.mxu0 }
 0x790   :  { %v1111_v35 = vadd.f32 %v1752_v34, %v1025_v33 }
 0x791   :  { %v1105_v36 = vpop.f32.mrf.mxu0 }
 0x792   :  { %v1125_v37 = vmul.f32 10.0, %v1111_v35  ;;  %v1106_v38 = vadd.f32 %v1105_v36, %v1025_v33 }
 0x793   :  { %v1755_v39 = vpop.f32.mrf.mxu0 }
 0x794   :  { %v1129_v40 = vand.u32 2147483647, %v1125_v37  ;;  %v1124_v41 = vmul.f32 10.0, %v1106_v38  ;;  %v1121_v42 = vadd.f32 %v1755_v39, %v1025_v33  ;;  %vm1145_vm5 = vcmp.ge.f32.partialorder %v1125_v37, 0.0 }
 0x795   :  { %v1115_v43 = vpop.f32.mrf.mxu0 }
 0x796   :  { %v1133_v44 = vsub.f32 0.0, %v1129_v40  ;;  %v1128_v45 = vand.u32 2147483647, %v1124_v41  ;;  %v1127_v46 = vmul.f32 10.0, %v1121_v42  ;;  %v1116_v48 = vadd.f32 %v1115_v43, %v1025_v33 }
 0x797   :  { %vm1144_vm6 = vcmp.ge.f32.partialorder %v1124_v41, 0.0 }
 0x798   :  { %v1138_v49 = vmul.f32 1.442695, %v1133_v44  ;;  %v1132_v50 = vsub.f32 0.0, %v1128_v45  ;;  %v1131_v51 = vand.u32 2147483647, %v1127_v46  ;;  %v1126_v52 = vmul.f32 10.0, %v1116_v48 }
 0x799   :  { %vm1147_vm7 = vcmp.ge.f32.partialorder %v1127_v46, 0.0 }
 0x79a   :  { %1832 = vpow2.f32 %v1138_v49  ;;  %v1136_v53 = vmul.f32 1.442695, %v1132_v50  ;;  %v1135_v54 = vsub.f32 0.0, %v1131_v51  ;;  %v1130_v55 = vand.u32 2147483647, %v1126_v52 }
 0x79b   :  { %vm1146_vm8 = vcmp.ge.f32.partialorder %v1126_v52, 0.0 }
 0x79c   :  { %1834 = vpow2.f32 %v1136_v53  ;;  %v1142_v56 = vmul.f32 1.442695, %v1135_v54  ;;  %v1134_v58 = vsub.f32 0.0, %v1130_v55 }
 0x79e   :  { %1836 = vpow2.f32 %v1142_v56  ;;  %v1140_v59 = vmul.f32 1.442695, %v1134_v58 }
 0x7a0   :  { %1838 = vpow2.f32 %v1140_v59 }
 0x7a7   :  { %v1833_v60 = vpop.eup %1832 }
 0x7a8   :  { %v1149_v61 = vadd.f32 1.0, %v1833_v60 }
 0x7a9   :  { %v1835_v62 = vpop.eup %1834 }
 0x7aa   :  { %1840 = vrcp.f32 %v1149_v61  ;;  %v1148_v63 = vadd.f32 1.0, %v1835_v62 }
 0x7ab   :  { %v1837_v0 = vpop.eup %1836 }
 0x7ac   :  { %1842 = vrcp.f32 %v1148_v63  ;;  %v1151_v2 = vadd.f32 1.0, %v1837_v0 }
 0x7ad   :  { %v1839_v3 = vpop.eup %1838 }
 0x7ae   :  { %1844 = vrcp.f32 %v1151_v2  ;;  %v1150_v4 = vadd.f32 1.0, %v1839_v3 }
 0x7b0   :  { %1846 = vrcp.f32 %v1150_v4 }
 0x7b1   :  { %1848 = vrcp.f32 %v1172_v47 }
 0x7b7   :  { %v1841_v5 = vpop.eup %1840 }
 0x7b8   :  { %v1161_v7 = vmul.f32 %v1841_v5, %v1833_v60 }
 0x7b9   :  { %v1843_v9 = vpop.eup %1842 }
 0x7ba   :  { %v2403_v10 = vsel %vm1145_vm5, %v1841_v5, %v1161_v7  ;;  %v1160_v12 = vmul.f32 %v1843_v9, %v1835_v62 }
 0x7bb   :  { %v1845_v13 = vpop.eup %1844  ;;  %1182 = vperm.xlu1 %1794, %v2403_v10  }
 0x7bc   :  { %v2406_v14 = vsel %vm1144_vm6, %v1843_v9, %v1160_v12  ;;  %v1163_v15 = vmul.f32 %v1845_v13, %v1837_v0 }
 0x7bd   :  { %1177 = vperm.xlu0 %1793, %v2406_v14   ;;  %v1847_v17 = vpop.eup %1846 }
 0x7be   :  { %v2409_v18 = vsel %vm1147_vm7, %v1845_v13, %v1163_v15  ;;  %v1162_v19 = vmul.f32 %v1847_v17, %v1839_v3 }
 0x7bf   :  { %1192 = vperm.xlu1 %1794, %v2409_v18  }
 0x7c0   :  { %v2412_v20 = vsel %vm1146_vm8, %v1847_v17, %v1162_v19 }
 0x7c1   :  { %1187 = vperm.xlu0 %1793, %v2412_v20  }
 0x7c3   :  { %1218 = vrot.lane.b32.xlu1 %v1208_v21, %s2005_s3 }
 0x7c5   :  { %1248 = vrot.lane.b32.xlu0 %v1537_v22, %s2005_s3 }
 0x7c7   :  { %1220 = vrot.lane.b32.xlu1 %v1209_v24, %s2005_s3 }
 0x836   :  { %v1183_v33 = vpop.permute.xlu1 %1182 }
 0x837   :  { %v1196_v34 = vmul.f32 %v1183_v33, %v2394_v23 }
 0x838   :  { %v1178_v35 = vpop.permute.xlu0 %1177 }
 0x839   :  { %v1195_v36 = vmul.f32 %v1178_v35, %v2384_v11  ;;  %v1227_v38 = vadd.f32 %v1217_v31, %v1196_v34 }
 0x83a   :  { %v1193_v37 = vpop.permute.xlu1 %1192 }
 0x83b   :  { %v1226_v39 = vadd.f32 %v1215_v32, %v1195_v36  ;;  %v1239_v44 = vadd.f32 %v1236_v30, %v1227_v38  ;;  %v1198_v46 = vmul.f32 %v1193_v37, %v2388_v16  ;;  %v1849_v16 = vpop.eup %1848 }
 0x83c   :  { %v1188_v40 = vpop.permute.xlu0 %1187  ;;  %1778 = vpush %v1849_v16 }
 0x83d   :  { %v1197_v41 = vmul.f32 %v1188_v40, %v2382_v8  ;;  %v1238_v45 = vadd.f32 %v1236_v30, %v1226_v39 }
 0x83e   :  { %v1219_v42 = vpop.permute.xlu1 %1218 }
 0x83f   :  { %v1228_v43 = vadd.f32 %v1219_v42, %v1197_v41 }
 0x840   :  { %v1249_v48 = vpop.permute.xlu0 %1248 }
 0x841   :  { %v1240_v49 = vadd.f32 %v1236_v30, %v1228_v43  ;;  %v1252_v23 = vadd.f32 %v1249_v48, %v1239_v44  ;;  %v1251_v51 = vadd.f32 %v1249_v48, %v1238_v45 }
 0x842   :  { %v1221_v50 = vpop.permute.xlu1 %1220 }
 0x843   :  { %v1229_v52 = vadd.f32 %v1221_v50, %v1198_v46  ;;  %v1256_v11 = vmax.f32 %v1252_v23, 0.0  ;;  %v1255_v53 = vmax.f32 %v1251_v51, 0.0  ;;  %v1253_v54 = vadd.f32 %v1249_v48, %v1240_v49 }
 0x845   :  { %v1241_v55 = vadd.f32 %v1236_v30, %v1229_v52  ;;  %1274 = vrot.lane.b32.xlu1 %v1256_v11, %s2005_s3  ;;  %1272 = vrot.lane.b32.xlu0 %v1255_v53, %s2005_s3  ;;  %v1257_v56 = vmax.f32 %v1253_v54, 0.0 }
 0x847   :  { %v1254_v8 = vadd.f32 %v1249_v48, %v1241_v55 }
 0x849   :  { %v1258_v58 = vmax.f32 %v1254_v8, 0.0  ;;  %1276 = vrot.lane.b32.xlu0 %v1257_v56, %s2005_s3 }
 0x84b   :  { %1278 = vrot.lane.b32.xlu1 %v1258_v58, %s2005_s3  ;;  %s1481_s3 = sld [smem:[#allocation5 + $0x1]] }
 0x84d   :  { %1449 = vrot.lane.b32.xlu0 %v2406_v14, %s2012_s22 }
 0x84f   :  { %1451 = vrot.lane.b32.xlu1 %v2403_v10, %s2012_s22 }
 0x851   :  { %1453 = vrot.lane.b32.xlu0 %v2412_v20, %s2012_s22  ;;  %v1267_v62 = vstv %s1481_s3 }
 0x853   :  { %1455 = vrot.lane.b32.xlu1 %v2409_v18, %s2012_s22 }
 0x86d   :  { %s1779_s26 = spop %1778 }
 0x86e   :  { %v1436_v45 = vstv %s1779_s26 }
 0x8b7   :  { %v1275_v47 = vpop.permute.xlu1 %1274  ;;  %v1273_v59 = vpop.permute.xlu0 %1272 }
 0x8b8   :  { %1772 = vmatprep.mubr.msk.f32.mxu1 %vm1026_vm4, %v1273_v59 }
 0x8b9   :  { %1773 = vmatmul.mubr.msk.f32.vlgmr.msra.gmra.mxu1 %vm1026_vm4, %v1275_v47 }
 0x8bb   :  { %v1277_v60 = vpop.permute.xlu0 %1276 }
 0x8bc   :  { %1775 = vmatprep.mubr.msk.f32.mxu1 %vm1026_vm4, %v1277_v60 }
 0x8bd   :  { %v1279_v61 = vpop.permute.xlu1 %1278 }
 0x8be   :  { %1776 = vmatmul.mubr.msk.f32.gmra.mxu1 %vm1026_vm4, %v1279_v61 }
 0x979   :  { %v1774_v63 = vpop.f32.mrf.mxu1 }
 0x97a   :  { %v1360_v0 = vadd.f32 %v1774_v63, %v1267_v62 }
 0x97b   :  { %v1354_v2 = vpop.f32.mrf.mxu1 }
 0x97c   :  { %v1378_v3 = vand.u32 2147483647, %v1360_v0  ;;  %v2467_v4 = vadd.f32 %v1354_v2, %v1267_v62  ;;  %v1374_v43 = vmax.f32 %v1360_v0, 0.0  ;;  %v1452_v0 = vpop.permute.xlu1 %1451 }
 0x97e   :  { %v1777_v5 = vpop.f32.mrf.mxu1  ;;  %v1382_v7 = vsub.f32 0.0, %v1378_v3  ;;  %v1377_v9 = vand.u32 2147483647, %v2467_v4  ;;  %v1373_v52 = vmax.f32 %v2467_v4, 0.0 }
 0x97f   :  { %v2470_v10 = vadd.f32 %v1777_v5, %v1267_v62 }
 0x980   :  { %v1364_v12 = vpop.f32.mrf.mxu1  ;;  %v1387_v13 = vmul.f32 1.442695, %v1382_v7  ;;  %v1381_v14 = vsub.f32 0.0, %v1377_v9 }
 0x981   :  { %v1380_v15 = vand.u32 2147483647, %v2470_v10  ;;  %v2473_v17 = vadd.f32 %v1364_v12, %v1267_v62  ;;  %v1376_v56 = vmax.f32 %v2470_v10, 0.0  ;;  %v1450_v10 = vpop.permute.xlu0 %1449 }
 0x982   :  { %1850 = vpow2.f32 %v1387_v13  ;;  %v1385_v18 = vmul.f32 1.442695, %v1381_v14 }
 0x983   :  { %v1384_v19 = vsub.f32 0.0, %v1380_v15  ;;  %v1379_v20 = vand.u32 2147483647, %v2473_v17  ;;  %v1375_v2 = vmax.f32 %v2473_v17, 0.0 }
 0x984   :  { %1852 = vpow2.f32 %v1385_v18 }
 0x985   :  { %v1391_v21 = vmul.f32 1.442695, %v1384_v19  ;;  %v1383_v22 = vsub.f32 0.0, %v1379_v20  ;;  %v1456_v19 = vpop.permute.xlu1 %1455 }
 0x987   :  { %1854 = vpow2.f32 %v1391_v21  ;;  %v1389_v24 = vmul.f32 1.442695, %v1383_v22 }
 0x989   :  { %1856 = vpow2.f32 %v1389_v24  ;;  %v1454_v24 = vpop.permute.xlu0 %1453 }
 0x98f   :  { %v1851_v25 = vpop.eup %1850 }
 0x990   :  { %v1402_v1 = vadd.f32 1.0, %v1851_v25  ;;  %v1405_v30 = vmul.f32 -0.5, %v1851_v25  ;;  %v1408_v34 = vand.u32 2147483647, %v1851_v25 }
 0x991   :  { %v1853_v26 = vpop.eup %1852 }
 0x992   :  { %1858 = vlog2.f32 %v1402_v1  ;;  %v1393_v57 = vadd.f32 1.0, %v1853_v26  ;;  %v1396_v31 = vmul.f32 -0.5, %v1853_v26  ;;  %v1406_v32 = vadd.f32 1.0, %v1405_v30 }
 0x993   :  { %v1399_v38 = vand.u32 2147483647, %v1853_v26  ;;  %vm1409_vm9 = vcmp.lt.f32.partialorder %v1408_v34, 0.0004427343 }
 0x994   :  { %v1855_v6 = vpop.eup %1854  ;;  %1860 = vlog2.f32 %v1393_v57  ;;  %v1397_v35 = vadd.f32 1.0, %v1396_v31  ;;  %v1407_v40 = vmul.f32 %v1851_v25, %v1406_v32 }
 0x995   :  { %v1420_v27 = vadd.f32 1.0, %v1855_v6  ;;  %v1423_v33 = vmul.f32 -0.5, %v1855_v6  ;;  %v1426_v44 = vand.u32 2147483647, %v1855_v6  ;;  %vm1400_vm10 = vcmp.lt.f32.partialorder %v1399_v38, 0.0004427343 }
 0x996   :  { %v1857_v28 = vpop.eup %1856  ;;  %v1398_v49 = vmul.f32 %v1853_v26, %v1397_v35 }
 0x997   :  { %1862 = vlog2.f32 %v1420_v27  ;;  %v1411_v29 = vadd.f32 1.0, %v1857_v28  ;;  %v1414_v36 = vmul.f32 -0.5, %v1857_v28  ;;  %v1424_v41 = vadd.f32 1.0, %v1423_v33 }
 0x998   :  { %v1417_v55 = vand.u32 2147483647, %v1857_v28  ;;  %vm1427_vm11 = vcmp.lt.f32.partialorder %v1426_v44, 0.0004427343 }
 0x999   :  { %1864 = vlog2.f32 %v1411_v29  ;;  %v1415_v50 = vadd.f32 1.0, %v1414_v36  ;;  %v1425_v54 = vmul.f32 %v1855_v6, %v1424_v41 }
 0x99a   :  { %vm1418_vm12 = vcmp.lt.f32.partialorder %v1417_v55, 0.0004427343 }
 0x99b   :  { %v1416_v59 = vmul.f32 %v1857_v28, %v1415_v50 }
 0x99f   :  { %v1859_v37 = vpop.eup %1858 }
 0x9a0   :  { %v1404_v39 = vmul.f32 0.6931472, %v1859_v37 }
 0x9a1   :  { %v1861_v42 = vpop.eup %1860 }
 0x9a2   :  { %v1410_v46 = vsel %vm1409_vm9, %v1407_v40, %v1404_v39  ;;  %v1395_v48 = vmul.f32 0.6931472, %v1861_v42 }
 0x9a3   :  { %v1430_v51 = vadd.f32 %v1410_v46, %v1374_v43 }
 0x9a4   :  { %v1863_v23 = vpop.eup %1862  ;;  %v1401_v11 = vsel %vm1400_vm10, %v1398_v49, %v1395_v48 }
 0x9a5   :  { %v1422_v53 = vmul.f32 0.6931472, %v1863_v23  ;;  %v1429_v8 = vadd.f32 %v1401_v11, %v1373_v52  ;;  %v1438_v58 = vmul.f32 %v1436_v45, %v1430_v51 }
 0x9a6   :  { %v1865_v16 = vpop.eup %1864 }
 0x9a7   :  { %v1428_v47 = vsel %vm1427_vm11, %v1425_v54, %v1422_v53  ;;  %v1413_v61 = vmul.f32 0.6931472, %v1865_v16  ;;  %v1437_v62 = vmul.f32 %v1436_v45, %v1429_v8  ;;  %v1442_v63 = vmax.f32 %v1438_v58, 0.0 }
 0x9a8   :  { %v1432_v60 = vadd.f32 %v1428_v47, %v1376_v56 }
 0x9a9   :  { %v1419_v3 = vsel %vm1418_vm12, %v1416_v59, %v1413_v61  ;;  %v1441_v5 = vmax.f32 %v1437_v62, 0.0  ;;  %v1446_v7 = vmin.f32 %v1442_v63, 1.0 }
 0x9aa   :  { %v1440_v4 = vmul.f32 %v1436_v45, %v1432_v60  ;;  %v1431_v9 = vadd.f32 %v1419_v3, %v1375_v2 }
 0x9ab   :  { %v1445_v13 = vmin.f32 %v1441_v5, 1.0  ;;  %v1463_v14 = vsel %vm1461_vm13, %v1446_v7, %v1452_v0 }
 0x9ac   :  { %v1444_v12 = vmax.f32 %v1440_v4, 0.0  ;;  %v1439_v15 = vmul.f32 %v1436_v45, %v1431_v9  ;;  %1468 = vst.msk [vmem:[%s2522_s23 + $0x8] sm:$0xff] %vm1466_vm14, %v1463_v14 }
 0x9ad   :  { %v1462_v18 = vsel %vm1461_vm13, %v1445_v13, %v1450_v10 }
 0x9ae   :  { %v1448_v17 = vmin.f32 %v1444_v12, 1.0  ;;  %v1443_v20 = vmax.f32 %v1439_v15, 0.0  ;;  %1467 = vst.msk [vmem:[%s2522_s23] sm:$0xff] %vm1466_vm14, %v1462_v18 }
 0x9b0   :  { %v1465_v21 = vsel %vm1461_vm13, %v1448_v17, %v1456_v19  ;;  %v1447_v22 = vmin.f32 %v1443_v20, 1.0 }
 0x9b1   :  { %1470 = vst.msk [vmem:[%s2522_s23 + $0x18] sm:$0xff] %vm1466_vm14, %v1465_v21 }
 0x9b2   :  { %v1464_v25 = vsel %vm1461_vm13, %v1447_v22, %v1454_v24 }
 0x9b3   :  { %1469 = vst.msk [vmem:[%s2522_s23 + $0x10] sm:$0xff] %vm1466_vm14, %v1464_v25 }
 0x9b4   :  { %1475 = vsyncpa [#allocation3], 1 }
 0x9b5   :  { %1476 = vsyncpa [#allocation9], 1 }
 0x9b6   :  { %1477 = vsyncpa [#allocation12], 1 }
 0x9b7   :  { %1478 = vsyncpa [#allocation4], 1 }
 0x9b8   :  { %1479 = vsyncpa [#allocation6], 1 }

</bundles_post_ra>
